<compile_context>
chip_gen: v7x
topology: tpu7x:2x2x1
jax: 0.10.0
libtpu: 0.0.40
codegen_flags: <defaults>
</compile_context>

<pallas_src>
import jax
import jax.numpy as jnp
from jax.experimental import pallas as pl
from jax.experimental.pallas import tpu as pltpu

_LANES = 128


def _vmem_limit_bytes():
    """Generation-aware scoped-VMEM limit (headroom left for Mosaic scratch)."""
    try:
        cap = pltpu.get_tpu_info().vmem_capacity_bytes
    except Exception:
        cap = 64 * 1024 * 1024  # conservative fallback (v7x per-TC VMEM)
    return int(cap * 0.8)       # ~103 MiB on v5e/v6e, ~51 MiB on v7x


def logits_lse_kernel(x_ref, w_ref, b_ref, logits_ref, lse_ref, m_ref, l_ref):
    # x_ref:      [tm, H]    (mxu dtype, e.g. bf16)
    # w_ref:      [H, tv]    (mxu dtype), streamed per vocab tile
    # b_ref:      [1, tv]    f32 bias tile
    # logits_ref: [tm, tv]   raw logits tile for this (i, j)  (lane-dense store)
    # lse_ref:    [tm, 1]    f32, resident across the vocab sweep, written last j
    # m_ref/l_ref:[tm, 128]  f32 lane-partial running max / running sum-exp
    j = pl.program_id(1)
    tv = w_ref.shape[1]
    n_chunks = tv // _LANES

    @pl.when(j == 0)
    def _init():
        m_ref[...] = jnp.full_like(m_ref, -jnp.inf)
        l_ref[...] = jnp.zeros_like(l_ref)

    # MXU matmul in bf16 with f32 accumulation; bias + softmax math in f32.
    logits = jnp.dot(x_ref[...], w_ref[...], preferred_element_type=jnp.float32)
    logits = logits + b_ref[...]                       # [tm, tv] f32

    # Lane-partial online softmax update: only VPU elementwise ops per step
    # (no per-step cross-lane reductions; static 128-lane slices are vreg picks).
    m_prev = m_ref[...]                                # [tm, 128]
    m_new = m_prev
    for k in range(n_chunks):
        m_new = jnp.maximum(m_new, logits[:, k * _LANES:(k + 1) * _LANES])
    s = jnp.zeros_like(m_new)
    for k in range(n_chunks):
        s = s + jnp.exp(logits[:, k * _LANES:(k + 1) * _LANES] - m_new)
    l_ref[...] = l_ref[...] * jnp.exp(m_prev - m_new) + s
    m_ref[...] = m_new

    # Lane-dense store of the raw logits tile (no [tm, V] resident block).
    logits_ref[...] = logits.astype(logits_ref.dtype)

    # Single cross-lane reduction per row tile, only on the last vocab step.
    @pl.when(j == pl.num_programs(1) - 1)
    def _finalize():
        m_lane = m_ref[...]
        l_lane = l_ref[...]
        m_row = jnp.max(m_lane, axis=-1, keepdims=True)                    # [tm, 1]
        l_row = jnp.sum(l_lane * jnp.exp(m_lane - m_row), axis=-1, keepdims=True)
        lse_ref[...] = m_row + jnp.log(l_row)


def normalize_kernel(logits_ref, lse_ref, o_ref):
    # out = logits - lse  (pure elementwise, lane-dense)
    o_ref[...] = (logits_ref[...].astype(jnp.float32) - lse_ref[...]).astype(o_ref.dtype)


def generator_forward(x, w, b, *, tm=None, tv=None,
                      mxu_dtype=jnp.bfloat16,
                      logits_dtype=jnp.float32,
                      out_dtype=None,
                      vmem_limit_bytes=None):
    """log_softmax(x @ w + b, axis=-1).

    x: [..., H]; w: [H, V] (transpose of PyTorch Linear's [V, H]); b: [V].
    Callers should keep `w` in `mxu_dtype` (bf16) persistently; the wrapper only
    casts when needed (the cast is an extra full HBM pass over the weight).
    """
    orig_shape = x.shape
    H = orig_shape[-1]
    V = w.shape[-1]
    assert w.shape[0] == H and b.shape == (V,)
    assert V % _LANES == 0, "vocab_size must be a multiple of 128"
    if out_dtype is None:
        out_dtype = x.dtype
    if vmem_limit_bytes is None:
        vmem_limit_bytes = _vmem_limit_bytes()

    x2d = x.reshape(-1, H)
    M = x2d.shape[0]
    mxu_item = jnp.dtype(mxu_dtype).itemsize
    logit_item = jnp.dtype(logits_dtype).itemsize
    out_item = jnp.dtype(out_dtype).itemsize
    budget = int(vmem_limit_bytes * 0.9)   # headroom inside the scoped limit

    # ---- vocab tile: prefer multiples of 256; cap the bf16 weight double-buffer --
    if tv is None:
        tv = _LANES
        for cand in (2048, 1024, 512, 256, _LANES):
            if V % cand == 0 and 2 * (H * cand * mxu_item) <= budget // 4:
                tv = cand
                break
    assert tv % _LANES == 0 and V % tv == 0, "tv must be a multiple of 128 dividing V"

    # ---- row tile: derive from the remaining VMEM budget -------------------------
    if tm is None:
        fixed = 2 * H * tv * mxu_item           # double-buffered weight tile
        fixed += 2 * tv * 4                     # double-buffered bias tile
        per_row = (2 * H * mxu_item             # x tile (double-buffered)
                   + 2 * tv * logit_item        # logits output tile (double-buffered)
                   + 2 * _LANES * 4             # lane-partial m/l scratch
                   + 2 * 4 + 16)                # lse + slack
        tm = (budget - fixed) // max(per_row, 1)
        tm = max(8, min(int(tm), 1024))
    tm = max(8, (int(tm) // 8) * 8)
    M_ceil8 = ((max(M, 1) + 7) // 8) * 8
    tm = min(tm, M_ceil8)
    # Keep >= 2 row tiles when M permits so the "parallel" row axis can be
    # sharded across TensorCores (v7x has 2 TCs per chip).
    if M_ceil8 >= 16:
        half = (((M + 1) // 2 + 7) // 8) * 8
        tm = min(tm, max(8, half))
    tm = max(8, tm)

    m_tiles = -(-M // tm)                  # cdiv
    M_pad = m_tiles * tm
    if M_pad != M:
        x2d = jnp.pad(x2d, ((0, M_pad - M), (0, 0)))

    xk = x2d if x2d.dtype == mxu_dtype else x2d.astype(mxu_dtype)
    wk = w if w.dtype == mxu_dtype else w.astype(mxu_dtype)
    b2d = b.reshape(1, V).astype(jnp.float32)

    cost_a = pl.CostEstimate(
        flops=2 * M_pad * H * V,
        transcendentals=M_pad * V,
        bytes_accessed=(M_pad * H * mxu_item
                        + m_tiles * H * V * mxu_item   # W re-streamed once per row tile
                        + V * 4
                        + M_pad * V * logit_item
                        + M_pad * 4),
    )

    # ---- Kernel A: raw logits + per-row logsumexp --------------------------------
    logits_hbm, lse_hbm = pl.pallas_call(
        logits_lse_kernel,
        out_shape=(jax.ShapeDtypeStruct((M_pad, V), logits_dtype),
                   jax.ShapeDtypeStruct((M_pad, 1), jnp.float32)),
        grid_spec=pltpu.PrefetchScalarGridSpec(
            num_scalar_prefetch=0,
            grid=(m_tiles, V // tv),                   # reduction-like vocab axis last
            in_specs=[
                pl.BlockSpec((tm, H), lambda i, j: (i, 0)),    # x row tile
                pl.BlockSpec((H, tv), lambda i, j: (0, j)),    # weight vocab tile
                pl.BlockSpec((1, tv), lambda i, j: (0, j)),    # bias vocab tile
            ],
            out_specs=[
                pl.BlockSpec((tm, tv), lambda i, j: (i, j)),   # raw logits (lane-dense)
                pl.BlockSpec((tm, 1), lambda i, j: (i, 0)),    # lse (resident per row tile)
            ],
            scratch_shapes=[
                pltpu.VMEM((tm, _LANES), jnp.float32),   # lane-partial running max
                pltpu.VMEM((tm, _LANES), jnp.float32),   # lane-partial running sum-exp
            ],
        ),
        compiler_params=pltpu.CompilerParams(
            dimension_semantics=("parallel", "arbitrary"),
            vmem_limit_bytes=int(vmem_limit_bytes),
        ),
        cost_estimate=cost_a,
    )(xk, wk, b2d)

    # ---- Kernel B: normalize (logits - lse), lane-dense elementwise --------------
    per_col_b = 2 * tm * (logit_item + out_item)       # double-buffered in+out per column
    tv_b = _LANES
    t = _LANES
    while t <= V:
        if V % t == 0 and t * per_col_b + 2 * tm * 4 <= budget:
            tv_b = t
        t += _LANES

    out2d = pl.pallas_call(
        normalize_kernel,
        out_shape=jax.ShapeDtypeStruct((M_pad, V), out_dtype),
        grid_spec=pltpu.PrefetchScalarGridSpec(
            num_scalar_prefetch=0,
            grid=(m_tiles, V // tv_b),
            in_specs=[
                pl.BlockSpec((tm, tv_b), lambda i, j: (i, j)),
                pl.BlockSpec((tm, 1), lambda i, j: (i, 0)),
            ],
            out_specs=pl.BlockSpec((tm, tv_b), lambda i, j: (i, j)),
        ),
        compiler_params=pltpu.CompilerParams(
            dimension_semantics=("parallel", "parallel"),
            vmem_limit_bytes=int(vmem_limit_bytes),
        ),
    )(logits_hbm, lse_hbm)

    out2d = out2d[:M]
    return out2d.reshape(*orig_shape[:-1], V)


if __name__ == "__main__":
    # Small shapes consistent with the module: [batch, seq, n_hidden] -> [batch, seq, vocab]
    batch, seq, n_hidden, vocab_size = 2, 8, 32, 512

    key = jax.random.PRNGKey(0)
    kx, kw, kb = jax.random.split(key, 3)

    # Deterministic init mimicking nn.Linear default (uniform +/- 1/sqrt(fan_in)).
    bound = 1.0 / (n_hidden ** 0.5)
    w = jax.random.uniform(kw, (n_hidden, vocab_size), jnp.float32, -bound, bound)
    b = jax.random.uniform(kb, (vocab_size,), jnp.float32, -bound, bound)
    x = jax.random.normal(kx, (batch, seq, n_hidden), jnp.float32)

    # Keep the weight in bf16 persistently (what a real caller should do).
    w_bf16 = w.astype(jnp.bfloat16)

    # tm=8, tv=256 -> kernel-A grid (2, 2): exercises the parallel row axis, the
    # streamed vocab axis, the lane-partial online accumulators and the finalize.
    out = generator_forward(x, w_bf16, b, tm=8, tv=256)
    out = jax.block_until_ready(out)
    assert out.shape == (batch, seq, vocab_size)
    assert bool(jnp.all(jnp.isfinite(out)))

    # Reference with the same bf16 rounding on the MXU inputs (f32 accumulation).
    xb = x.astype(jnp.bfloat16).astype(jnp.float32)
    wb = w_bf16.astype(jnp.float32)
    ref = jax.nn.log_softmax(jnp.einsum("bsh,hv->bsv", xb, wb) + b, axis=-1)
    assert jnp.allclose(out, ref, atol=1e-4, rtol=1e-4), "mismatch vs bf16-matmul reference"

    # Loose check against the full-f32 reference (bounds the bf16 MXU rounding).
    ref_f32 = jax.nn.log_softmax(jnp.einsum("bsh,hv->bsv", x, w) + b, axis=-1)
    assert jnp.allclose(out, ref_f32, atol=3e-2, rtol=3e-2), "mismatch vs f32 reference"

    # Second call: auto tile selection + row padding path (M=10 not a multiple of 8).
    out2 = generator_forward(x[:, :5], w_bf16, b)
    out2 = jax.block_until_ready(out2)
    assert out2.shape == (batch, 5, vocab_size)
    assert jnp.allclose(out2, ref[:, :5], atol=1e-4, rtol=1e-4), "mismatch on padded-M path"

    print("KERNEL_OK")
</pallas_src>

<mosaic_0001>
module attributes {stable_mosaic.version = 11 : i64} {
  func.func @logits_lse_kernel(%arg0: i32, %arg1: i32, %arg2: memref<8x32xbf16, #tpu.memory_space<vmem>>, %arg3: memref<32x256xbf16, #tpu.memory_space<vmem>>, %arg4: memref<1x256xf32, #tpu.memory_space<vmem>>, %arg5: memref<8x256xf32, #tpu.memory_space<vmem>>, %arg6: memref<8x1xf32, #tpu.memory_space<vmem>>, %arg7: memref<8x128xf32, #tpu.memory_space<vmem>>, %arg8: memref<8x128xf32, #tpu.memory_space<vmem>>) attributes {dimension_semantics = [#tpu.dimension_semantics<parallel>, #tpu.dimension_semantics<arbitrary>], iteration_bounds = array<i64: 2, 2>, scalar_prefetch = 0 : i64, scratch_operands = 2 : i64, tpu.core_type = #tpu.core_type<tc>, window_params = [{transform_indices = @transform_0, window_bounds = array<i64: 8, 32>}, {transform_indices = @transform_1, window_bounds = array<i64: 32, 256>}, {transform_indices = @transform_2, window_bounds = array<i64: 1, 256>}, {transform_indices = @transform_3, window_bounds = array<i64: 8, 256>}, {transform_indices = @transform_4, window_bounds = array<i64: 8, 1>}]} {
    %c0_i32 = arith.constant 0 : i32
    %0 = arith.cmpi eq, %arg1, %c0_i32 : i32
    %1 = arith.extui %0 : i1 to i32
    %c0_i32_0 = arith.constant 0 : i32
    %2 = arith.cmpi ne, %1, %c0_i32_0 : i32
    scf.if %2 {
      %cst_18 = arith.constant 0xFF800000 : f32
      %34 = vector.broadcast %cst_18 : f32 to vector<8x128xf32>
      %c0_19 = arith.constant 0 : index
      %c0_20 = arith.constant 0 : index
      %35 = vector.load %arg7[%c0_19, %c0_20] : memref<8x128xf32, #tpu.memory_space<vmem>>, vector<8x128xf32>
      tpu.vector_store %arg7[%c0_19, %c0_20], %34 {strides = array<i32>} : memref<8x128xf32, #tpu.memory_space<vmem>>, vector<8x128xf32>,
      %cst_21 = arith.constant 0.000000e+00 : f32
      %36 = vector.broadcast %cst_21 : f32 to vector<8x128xf32>
      %c0_22 = arith.constant 0 : index
      %c0_23 = arith.constant 0 : index
      %37 = vector.load %arg8[%c0_22, %c0_23] : memref<8x128xf32, #tpu.memory_space<vmem>>, vector<8x128xf32>
      tpu.vector_store %arg8[%c0_22, %c0_23], %36 {strides = array<i32>} : memref<8x128xf32, #tpu.memory_space<vmem>>, vector<8x128xf32>,
    } else {
    }
    %c0 = arith.constant 0 : index
    %c0_1 = arith.constant 0 : index
    %3 = vector.load %arg2[%c0, %c0_1] : memref<8x32xbf16, #tpu.memory_space<vmem>>, vector<8x32xbf16>
    %c0_2 = arith.constant 0 : index
    %c0_3 = arith.constant 0 : index
    %4 = vector.load %arg3[%c0_2, %c0_3] : memref<32x256xbf16, #tpu.memory_space<vmem>>, vector<32x256xbf16>
    %cst = arith.constant dense<0.000000e+00> : vector<8x256xf32>
    %5 = tpu.matmul %3, %4, %cst {dimension_numbers = #tpu.dot_dimension_numbers<[1], [0], [0], [1], [0, 0, 1, 1], [], []>} : vector<8x32xbf16>, vector<32x256xbf16>, vector<8x256xf32> -> vector<8x256xf32>
    %c0_4 = arith.constant 0 : index
    %c0_5 = arith.constant 0 : index
    %6 = vector.load %arg4[%c0_4, %c0_5] : memref<1x256xf32, #tpu.memory_space<vmem>>, vector<1x256xf32>
    %7 = vector.broadcast %6 : vector<1x256xf32> to vector<8x256xf32>
    %8 = arith.addf %5, %7 : vector<8x256xf32>
    %c0_6 = arith.constant 0 : index
    %c0_7 = arith.constant 0 : index
    %9 = vector.load %arg7[%c0_6, %c0_7] : memref<8x128xf32, #tpu.memory_space<vmem>>, vector<8x128xf32>
    %10 = vector.extract_strided_slice %8 {offsets = [0, 0], sizes = [8, 128], strides = [1, 1]} : vector<8x256xf32> to vector<8x128xf32>
    %11 = arith.maximumf %9, %10 : vector<8x128xf32>
    %12 = vector.extract_strided_slice %8 {offsets = [0, 128], sizes = [8, 128], strides = [1, 1]} : vector<8x256xf32> to vector<8x128xf32>
    %13 = arith.maximumf %11, %12 : vector<8x128xf32>
    %cst_8 = arith.constant 0.000000e+00 : f32
    %14 = vector.broadcast %cst_8 : f32 to vector<8x128xf32>
    %15 = vector.extract_strided_slice %8 {offsets = [0, 0], sizes = [8, 128], strides = [1, 1]} : vector<8x256xf32> to vector<8x128xf32>
    %16 = arith.subf %15, %13 : vector<8x128xf32>
    %17 = math.exp %16 : vector<8x128xf32>
    %18 = arith.addf %14, %17 : vector<8x128xf32>
    %19 = vector.extract_strided_slice %8 {offsets = [0, 128], sizes = [8, 128], strides = [1, 1]} : vector<8x256xf32> to vector<8x128xf32>
    %20 = arith.subf %19, %13 : vector<8x128xf32>
    %21 = math.exp %20 : vector<8x128xf32>
    %22 = arith.addf %18, %21 : vector<8x128xf32>
    %c0_9 = arith.constant 0 : index
    %c0_10 = arith.constant 0 : index
    %23 = vector.load %arg8[%c0_9, %c0_10] : memref<8x128xf32, #tpu.memory_space<vmem>>, vector<8x128xf32>
    %24 = arith.subf %9, %13 : vector<8x128xf32>
    %25 = math.exp %24 : vector<8x128xf32>
    %26 = arith.mulf %23, %25 : vector<8x128xf32>
    %27 = arith.addf %26, %22 : vector<8x128xf32>
    %c0_11 = arith.constant 0 : index
    %c0_12 = arith.constant 0 : index
    %28 = vector.load %arg8[%c0_11, %c0_12] : memref<8x128xf32, #tpu.memory_space<vmem>>, vector<8x128xf32>
    tpu.vector_store %arg8[%c0_11, %c0_12], %27 {strides = array<i32>} : memref<8x128xf32, #tpu.memory_space<vmem>>, vector<8x128xf32>,
    %c0_13 = arith.constant 0 : index
    %c0_14 = arith.constant 0 : index
    %29 = vector.load %arg7[%c0_13, %c0_14] : memref<8x128xf32, #tpu.memory_space<vmem>>, vector<8x128xf32>
    tpu.vector_store %arg7[%c0_13, %c0_14], %13 {strides = array<i32>} : memref<8x128xf32, #tpu.memory_space<vmem>>, vector<8x128xf32>,
    %c0_15 = arith.constant 0 : index
    %c0_16 = arith.constant 0 : index
    %30 = vector.load %arg5[%c0_15, %c0_16] : memref<8x256xf32, #tpu.memory_space<vmem>>, vector<8x256xf32>
    tpu.vector_store %arg5[%c0_15, %c0_16], %8 {strides = array<i32>} : memref<8x256xf32, #tpu.memory_space<vmem>>, vector<8x256xf32>,
    %c1_i32 = arith.constant 1 : i32
    %31 = arith.cmpi eq, %arg1, %c1_i32 : i32
    %32 = arith.extui %31 : i1 to i32
    %c0_i32_17 = arith.constant 0 : i32
    %33 = arith.cmpi ne, %32, %c0_i32_17 : i32
    scf.if %33 {
      %c0_18 = arith.constant 0 : index
      %c0_19 = arith.constant 0 : index
      %34 = vector.load %arg7[%c0_18, %c0_19] : memref<8x128xf32, #tpu.memory_space<vmem>>, vector<8x128xf32>
      %c0_20 = arith.constant 0 : index
      %c0_21 = arith.constant 0 : index
      %35 = vector.load %arg8[%c0_20, %c0_21] : memref<8x128xf32, #tpu.memory_space<vmem>>, vector<8x128xf32>
      %cst_22 = arith.constant dense<0xFF800000> : vector<8xf32>
      %36 = vector.multi_reduction <maximumf>, %34, %cst_22 [1] : vector<8x128xf32> to vector<8xf32>
      %37 = vector.shape_cast %36 : vector<8xf32> to vector<8x1xf32>
      %38 = vector.broadcast %37 : vector<8x1xf32> to vector<8x128xf32>
      %39 = arith.subf %34, %38 : vector<8x128xf32>
      %40 = math.exp %39 : vector<8x128xf32>
      %41 = arith.mulf %35, %40 : vector<8x128xf32>
      %cst_23 = arith.constant dense<0.000000e+00> : vector<8xf32>
      %42 = vector.multi_reduction <add>, %41, %cst_23 [1] : vector<8x128xf32> to vector<8xf32>
      %43 = vector.shape_cast %42 : vector<8xf32> to vector<8x1xf32>
      %44 = math.log %43 : vector<8x1xf32>
      %45 = arith.addf %37, %44 : vector<8x1xf32>
      %c0_24 = arith.constant 0 : index
      %c0_25 = arith.constant 0 : index
      %46 = vector.load %arg6[%c0_24, %c0_25] : memref<8x1xf32, #tpu.memory_space<vmem>>, vector<8x1xf32>
      tpu.vector_store %arg6[%c0_24, %c0_25], %45 {strides = array<i32>} : memref<8x1xf32, #tpu.memory_space<vmem>>, vector<8x1xf32>,
    } else {
    }
    return
  }
  func.func @transform_0(%arg0: i32, %arg1: i32) -> (i32, i32) {
    %c0_i32 = arith.constant 0 : i32
    %c0_i32_0 = arith.constant 0 : i32
    return %arg0, %c0_i32 : i32, i32
  }
  func.func @transform_1(%arg0: i32, %arg1: i32) -> (i32, i32) {
    %c0_i32 = arith.constant 0 : i32
    %c0_i32_0 = arith.constant 0 : i32
    return %c0_i32, %arg1 : i32, i32
  }
  func.func @transform_2(%arg0: i32, %arg1: i32) -> (i32, i32) {
    %c0_i32 = arith.constant 0 : i32
    %c0_i32_0 = arith.constant 0 : i32
    return %c0_i32, %arg1 : i32, i32
  }
  func.func @transform_3(%arg0: i32, %arg1: i32) -> (i32, i32) {
    %c0_i32 = arith.constant 0 : i32
    return %arg0, %arg1 : i32, i32
  }
  func.func @transform_4(%arg0: i32, %arg1: i32) -> (i32, i32) {
    %c0_i32 = arith.constant 0 : i32
    %c0_i32_0 = arith.constant 0 : i32
    return %arg0, %c0_i32 : i32, i32
  }
}

</mosaic_0001>

<bundles_post_ra>
// kernel: tpu_custom_call.1
= control target key start
LH: loop header
LB: loop body
LE: loop exit
PB: predicated region body
PF: predicated region fallthrough
CT: control target
= control target key end

     0   :  { %s1384_s0 = inlined_call_operand.hbm [shape: bf16[16,32], index: 0, kind: input, shape index: {}]   ;;  %s1385_s1 = inlined_call_operand.hbm [shape: bf16[32,512], index: 1, kind: input, shape index: {}]   ;;  %s1386_s2 = inlined_call_operand.vmem [shape: f32[1,512], index: 2, kind: input, shape index: {}]   ;;  %s1387_s3 = inlined_call_operand.hbm [shape: f32[16,512], index: 3, kind: output, shape index: {0}]   ;;  %s1388_s4 = inlined_call_operand.vmem [shape: f32[16,1], index: 4, kind: output, shape index: {1}]  }
   0x1   :  { %1398 = sst [smem:[#allocation21_spill]] %s1384_s0 }
   0x2   :  { %10 = vsyncpa [#allocation5], 0 }
   0x3   :  { %12 = vsyncpa [#allocation5 + $0x1], 0 }
   0x4   :  { %13 = vsyncpa [#allocation8], 0 }
   0x5   :  { %15 = vsyncpa [#allocation8 + $0x1], 0 }
   0x6   :  { %16 = vsyncpa [#allocation6], 0 }
   0x7   :  { %18 = vsyncpa [#allocation6 + $0x1], 0  ;;  %s1020_s15 = smov 0   ;;  %s1022_s16 = smov 0  }
   0x8   :  { %s1024_s17 = smov 0   ;;  %s1026_s18 = smov 0  }
   0x9   :  { %s1028_s19 = smov 0   ;;  %s1030_s20 = smov 0  }
   0xa   :  { %s1032_s21 = smov 0   ;;  %s1034_s22 = smov 0  }
   0xb   :  { %s1036_s23 = smov 0   ;;  %s1038_s24 = smov 0  }
   0xc   :  { %s1040_s25 = smov 0   ;;  %s1042_s26 = smov 0  }
   0xd   :  { %s1044_s27 = smov 0   ;;  %s1046_s28 = smov 0  }
   0xe LB: > { %1399 = sst [smem:[#allocation13_spill]] %s932_s15  ;;  %s1389_s29 = sadd.s32 4294967295, %s984_s28   ;;  %s984_s28 = sphi %s1046_s28, %s24_s28   ;;  %s980_s27 = sphi %s1044_s27, %s1434_s27   ;;  %s976_s26 = sphi %s1042_s26, %s1433_s26   ;;  %s972_s25 = sphi %s1040_s25, %s1432_s25   ;;  %s968_s24 = sphi %s1038_s24, %s1431_s24   ;;  %s964_s23 = sphi %s1036_s23, %s1443_s23   ;;  %s960_s22 = sphi %s1034_s22, %s1442_s22   ;;  %s956_s21 = sphi %s1032_s21, %s1441_s21   ;;  %s952_s20 = sphi %s1030_s20, %s1440_s20   ;;  %s948_s19 = sphi %s1028_s19, %s1439_s19   ;;  %s944_s18 = sphi %s1026_s18, %s1438_s18   ;;  %s940_s17 = sphi %s1024_s17, %s1437_s17   ;;  %s936_s16 = sphi %s1022_s16, %s1436_s16   ;;  %s932_s15 = sphi %s1020_s15, %s1435_s15  }
   0xf   : > { %1400 = sst [smem:[#allocation14_spill]] %s976_s26  ;;  %s33_s5 = sadd.s32 1, %s976_s26 }
  0x10   : > { %1401 = sst [smem:[#allocation15_spill]] %s980_s27  ;;  %s36_s6 = sadd.s32 1, %s980_s27 }
  0x11   : > { %p34_p0 = scmp.ge.s32.totalorder %s33_s5, 2  ;;  %s43_s7 = sadd.s32 1, %s964_s23 }
  0x12   : > { %p50_p1 = scmp.ne.s32.totalorder %s964_s23, %s960_s22  ;;  %p51_p2 = scmp.eq.s32.totalorder %s984_s28, 0 }
  0x13   : > { %s1445_s5 = smov (%p34_p0, %s33_s5), 0  ;;  %s1447_s6 = smov (!%p34_p0, %s36_s6), %s980_s27 }
  0x14   : > { %1402 = sst [smem:[#allocation16_spill]] %s1445_s5  ;;  %p1101_p3 = por %p51_p2, %p50_p1 }
  0x15   : > { %p56_p4 = scmp.ne.s32.totalorder %s960_s22, %s956_s21  ;;  %p38_p5 = scmp.ge.s32.totalorder %s1447_s6, 2 }
  0x16   : > { %p1108_p6 = scmp.eq.s32.totalorder %s1389_s29, 0  ;;  %s66_s10 = ssub.s32 %s976_s26, %s1445_s5 }
  0x17   : > { %s69_s11 = sadd.s32 1, %s952_s20  ;;  %s1449_s6 = smov (%p38_p5, %s1447_s6), 0 }
  0x18   : > { %1405 = sst [smem:[#allocation17_spill]] %s1449_s6  ;;  %p1119_p7 = por %p1108_p6, %p56_p4 }
  0x19   : > { %p67_p8 = scmp.eq.s32.totalorder %s66_s10, 0  ;;  %s40_s13 = ssub.s32 %s980_s27, %s1449_s6 }
  0x1a   : > { %s1406_s12 = scalar_select %p1119_p7, 1, 0 }
  0x1b   : > { %p76_p9 = scmp.ne.s32.totalorder %s952_s20, %s948_s19  ;;  %p41_p10 = scmp.eq.s32.totalorder %s40_s13, 0 }
  0x1c   : > { %p82_p11 = scmp.ne.s32.totalorder %s948_s19, %s944_s18  ;;  %s120_s6 = sor.u32 %s66_s10, %s40_s13 }
  0x1d   : > { %s1130_s14 = scalar_select %p67_p8, %s952_s20, %s69_s11  }
  0x1e   : > { %s1133_s21 = scalar_select %p41_p10, %s964_s23, %s43_s7  }
  0x1f   : > { %1407 = sst [smem:[#allocation18_spill]] %s1130_s14  ;;  %p1137_p12 = por %p76_p9, %p51_p2 }
  0x20   : > { %1408 = sst [smem:[#allocation19_spill]] %s1133_s21  ;;  %p1143_p13 = por %p82_p11, %p1108_p6 }
  0x21   : > { %s123_s5 = sadd.s32 1, %s940_s17  ;;  %p121_p0 = scmp.eq.s32.totalorder %s120_s6, 0 }
  0x22   : > { %s1410_s29 = scalar_select %p1143_p13, 1, 0 }
  0x23   : > { %p133_p1 = scmp.ne.s32.totalorder %s940_s17, %s936_s16  ;;  %s1411_s18 = sadd.s32 4294967295, %s984_s28  }
  0x24   : > { %p134_p4 = scmp.eq.s32.totalorder %s1411_s18, 3  ;;  %p139_p5 = scmp.ne.s32.totalorder %s936_s16, %s932_s15 }
  0x25   : > { %s1155_s7 = scalar_select %p121_p0, %s940_s17, %s123_s5  }
  0x26   : > { %p1157_p2 = por %p134_p4, %p133_p1  ;;  %s1414_s9 = sadd.s32 4294967294, %s984_s28  }
  0x27   : > { %1412 = sst [smem:[#allocation20_spill]] %s1155_s7  ;;  %p140_p6 = scmp.eq.s32.totalorder %s1414_s9, 3 }
  0x28   : > { %s1413_s11 = scalar_select %p1157_p2, 1, 0 }
  0x29   : > { %p638_p8 = scmp.lt.s32.totalorder %s984_s28, 4  ;;  %p1164_p9 = por %p140_p6, %p139_p5 }
  0x2a   : > { %s186_s6 = sand.u32 1, %s964_s23   ;;  %s597_s21 = sshll.u32 %s980_s27, 6 }
  0x2b   : > { %s1415_s10 = scalar_select %p1164_p9, 1, 0 }
  0x2c   : > { %s596_s13 = sshll.u32 %s186_s6, 2  ;;  %s1416_s0 = sld [smem:[#allocation21_spill]] }
  0x2d   : > { %s190_s5 = scalar_lea.vmem [#allocation4], %s596_s13  ;;  %p1179_p10 = pnand %p638_p8, %p1101_p3 }
  0x2e   : > { %s197_s7 = sshll.u32 %s190_s5, 4  ;;  %p1185_p11 = pnand %p638_p8, %p1137_p12  ;;  %s1175_s7 = int_to_ptr.vmem [resolvable:$true] %s197_s7 }
  0x2f   : > { %p776_p5 = pneg %p1179_p10 }
  0x32   : > { %s1173_s15 = scalar_lea.hbm %s1416_s0, %s597_s21  ;;  %s187_s21 = scalar_lea.sflag [#allocation5], %s186_s6 }
  0x33   : > { %s774_s13 = scalar_lea.hbm %s1173_s15, 64  ;;  %s779_s30 = scalar_lea.hbm %s1416_s0, 128 }
  0x34   : > { %p775_p4 = scmp.ne.s32.totalorder %s1173_s15, %s774_s13  ;;  %p780_p12 = scmp.lt.u32.totalorder %s1173_s15, %s1416_s0 }
  0x35   : > { %p781_p8 = scmp.lt.u32.totalorder %s779_s30, %s774_s13  ;;  %p783_p1 = scmp.lt.u32.totalorder %s774_s13, %s1173_s15 }
  0x36   : > { %p777_p3 = pnand %p776_p5, %p775_p4 }
  0x37   : > { %p782_p0 = por %p781_p8, %p780_p12 }
  0x38   : > { %p778_p6 = pneg %p777_p3 }
  0x39   : > { %p784_p9 = por %p783_p1, %p782_p0 }
  0x3b   : > { %p785_p2 = pnand %p784_p9, %p778_p6 }
  0x3d   : > { %788 = shalt.err (!%p785_p2)
}
  0x3e   : > { %s789_s6 = scalar_lea.vmem %s1175_s7, 64  ;;  %s986_s8 = smov [#allocation4]  }
  0x3f   : > { %p790_p4 = scmp.ne.s32.totalorder %s1175_s7, %s789_s6  ;;  %s794_s18 = sshll.u32 %s986_s8, 4  ;;  %s795_s18 = int_to_ptr.vmem [resolvable:$false] %s794_s18 }
  0x40   : > { %s796_s27 = scalar_lea.vmem %s795_s18, 128  ;;  %p797_p7 = scmp.lt.s32.totalorder %s1175_s7, %s795_s18 }
  0x41   : > { %p792_p3 = pnand %p790_p4, %p776_p5  ;;  %p798_p12 = scmp.lt.s32.totalorder %s796_s27, %s789_s6 }
  0x43   : > { %p793_p13 = pneg %p792_p3  ;;  %p799_p8 = por %p798_p12, %p797_p7 }
  0x45   : > { %p800_p0 = pnand %p799_p8, %p793_p13 }
  0x47   : > { %803 = shalt.err (!%p800_p0)
}
  0x48   : > { %630 = dma.hbm_to_vmem [thread:$0]  (!%p1179_p10), %s1173_s15, 64, %s1175_s7, %s187_s21  }
  0x49   : > { %p1419_p2 = scmp.lt.s32.totalorder %s984_s28, 5  ;;  %p1420_p9 = scmp.ge.s32.totalorder %s984_s28, 1 }
  0x4a   : > { %s204_s30 = sand.u32 1, %s952_s20   ;;  %s620_s5 = sshll.u32 %s976_s26, 7 }
  0x4b   : > { %p1220_p1 = pnand %p1420_p9, %p1419_p2  ;;  %s598_s6 = sshll.u32 %s204_s30, 5 }
  0x4c   : > { %s1229_s18 = scalar_lea.hbm %s1385_s1, %s620_s5  ;;  %s208_s27 = scalar_lea.vmem [#allocation7], %s598_s6 }
  0x4d   : > { %s215_s15 = sshll.u32 %s208_s27, 4  ;;  %s1233_s7 = scalar_lea.sflag [#allocation8], %s204_s30  ;;  %s1231_s15 = int_to_ptr.vmem [resolvable:$true] %s215_s15 }
  0x4e   : > { %s804_s21 = scalar_lea.hbm %s1229_s18, 512  ;;  %p806_p13 = pneg %p1185_p11 }
  0x4f   : > { %p805_p7 = scmp.ne.s32.totalorder %s1229_s18, %s804_s21  ;;  %s809_s9 = scalar_lea.hbm %s1385_s1, 1024 }
  0x50   : > { %p810_p6 = scmp.lt.u32.totalorder %s1229_s18, %s1385_s1  ;;  %p811_p4 = scmp.lt.u32.totalorder %s809_s9, %s804_s21 }
  0x51   : > { %p807_p10 = pnand %p806_p13, %p805_p7  ;;  %p813_p12 = scmp.lt.u32.totalorder %s804_s21, %s1229_s18 }
  0x52   : > { %p812_p3 = por %p811_p4, %p810_p6 }
  0x53   : > { %p808_p5 = pneg %p807_p10 }
  0x54   : > { %p814_p8 = por %p813_p12, %p812_p3 }
  0x56   : > { %p815_p0 = pnand %p814_p8, %p808_p5 }
  0x58   : > { %818 = shalt.err (!%p815_p0)
}
  0x59   : > { %s819_s30 = scalar_lea.vmem %s1231_s15, 512  ;;  %s987_s6 = smov [#allocation7]  }
  0x5a   : > { %p820_p2 = scmp.ne.s32.totalorder %s1231_s15, %s819_s30  ;;  %s824_s27 = sshll.u32 %s987_s6, 4  ;;  %s825_s27 = int_to_ptr.vmem [resolvable:$false] %s824_s27 }
  0x5b   : > { %s826_s0 = scalar_lea.vmem %s825_s27, 1024  ;;  %p827_p10 = scmp.lt.s32.totalorder %s1231_s15, %s825_s27 }
  0x5c   : > { %p822_p9 = pnand %p820_p2, %p806_p13  ;;  %p828_p6 = scmp.lt.s32.totalorder %s826_s0, %s819_s30 }
  0x5e   : > { %p823_p7 = pneg %p822_p9  ;;  %p829_p4 = por %p828_p6, %p827_p10 }
  0x60   : > { %p830_p3 = pnand %p829_p4, %p823_p7 }
  0x62   : > { %833 = shalt.err (!%p830_p3)
}
  0x63   : > { %s988_s26 = smov 256   ;;  %s989_s21 = smov 128  }
  0x64   : > { %s990_s5 = smov 8   ;;  %235 = sbr.rel (%p1220_p1) target bundleno = 704 (0x2c0), region = 32 }
  0x65   : > { %633 = dma.hbm_to_vmem [thread:$0]  (!%p1185_p11), %s1229_s18, 512, %s1231_s15, %s1233_s7, %s988_s26, %s989_s21, %s990_s5  }
  0x66   : > { %s237_s8 = sand.u32 (!%p1220_p1), 1, %s960_s22   ;;  %p1422_p13 = scmp.ne.s32.totalorder (!%p1220_p1), %s1406_s12, 0 }
  0x67   : > { %s1264_s9 = sshll.u32 (!%p1220_p1), %s237_s8, 2  ;;  %s238_s30 = scalar_lea.sflag (!%p1220_p1), [#allocation5], %s237_s8 }
  0x68   : > { %s241_s6 = scalar_lea.vmem (!%p1220_p1), [#allocation4], %s1264_s9 }
  0x6b   : > { %919 = dma.done.wait (%p1422_p13), %s238_s30, 64  }
  0x6c   : > { %921 = vsyncadd (%p1422_p13), %s238_s30, 4294967232  ;;  %s246_s14 = sand.u32 1, %s948_s19   ;;  %p1423_p11 = scmp.ne.s32.totalorder %s1410_s29, 0 }
  0x6d   : > { %s603_s18 = sshll.u32 %s246_s14, 5  ;;  %s247_s15 = scalar_lea.sflag [#allocation8], %s246_s14 }
  0x6e   : > { %s250_s13 = scalar_lea.vmem [#allocation7], %s603_s18 }
  0x6f   : > { %923 = dma.done.wait (%p1423_p11), %s247_s15, 512  }
  0x70   : > { %925 = vsyncadd (%p1423_p11), %s247_s15, 4294966784  ;;  %s279_s7 = sand.u32 1, %s936_s16   ;;  %s1278_s27 = sshll.u32 %s968_s24, 1 }
  0x71   : > { %s604_s12 = sshll.u32 %s279_s7, 4  ;;  %p290_p1 = scmp.lt.s32.totalorder %s1278_s27, 3 }
  0x72   : > { %p295_p5 = scmp.lt.s32.totalorder %s972_s25, 1  ;;  %s1297_s15 = scalar_lea.vmem [#allocation9], %s604_s12 }
  0x73   : > { %s1285_s0 = scalar_select %p290_p1, %s1278_s27, 3 }
  0x74   : > { %s296_s26 = scalar_select %p295_p5, %s972_s25, 1 }
  0x75   : > { %s292_s5 = scalar_lea.vmem %s1386_s2, %s1285_s0  ;;  %p607_p12 = scmp.ne.s32.totalorder %s968_s24, 0 }
  0x76   : > { %s606_s8 = sshll.u32 %s296_s26, 3  ;;  %v991_v0 = vmov (!%p607_p12), -inf   ;;  %v992_v1 = vmov (!%p607_p12), 0.0  }
  0x77   : > { %s1295_s18 = scalar_lea.vmem %s1388_s4, %s606_s8  ;;  %303 = sbr.rel (%p607_p12) target bundleno = 126 (0x7e), region = 44  ;;  %304 = vst [vmem:[#allocation2] sm:$0xff] (!%p607_p12), %v991_v0  ;;  %305 = vst [vmem:[#allocation3] sm:$0xff] (!%p607_p12), %v992_v1 }
  0x7e PF: > { %v758_v2 = vld [vmem:[%s250_s13 + $0x4] ss:$8 sps:$4 sm:$0xff]   ;;  %v760_v3 = vld [vmem:[%s250_s13] ss:$8 sps:$4 sm:$0xff]   ;;  %v993_v4 = vmov 0   ;;  %vm343_vm0 = vcmask 261120   ;;  %v313_v8 = vlaneseq }
  0x7f   : > { %379 = vmatprep.mubr.bf16.mxu0 %v993_v4  ;;  %347 = vmatprep.subr.bf16.mxu0 %v758_v2  ;;  %v761_v5 = vld [vmem:[%s250_s13 + $0x14] ss:$8 sps:$4 sm:$0xff]   ;;  %v763_v6 = vld [vmem:[%s250_s13 + $0x10] ss:$8 sps:$4 sm:$0xff]   ;;  %v388_v16 = vld [vmem:[#allocation2] sm:$0xff]  ;;  %p613_p8 = scmp.ne.s32.totalorder %s968_s24, 1 }
  0x80   : > { %348 = vmatpush1.bf16.msra.mxu0 %v760_v3  ;;  %v306_v7 = vld [vmem:[%s241_s6] sm:$0xf]  ;;  %v314_v9 = vshrl.u32 %v313_v8, 7  ;;  %v399_v31 = vld [vmem:[#allocation3] sm:$0xff]  ;;  %vm426_vm1 = vcmask (!%p613_p8), 7168  }
  0x81   : > { %349 = vmatprep.subr.bf16.mxu0 %v761_v5  ;;  %v311_v11 = vld [vmem:[%s292_s5] sm:$0x3] }
  0x82   : > { %v315_v10 = vsub.s32 0, %v314_v9  ;;  %v319_v12 = vsub.s32 1, %v314_v9 }
  0x84   : > { %350 = vmatpush1.bf16.msra.mxu0 %v763_v6  ;;  %v316_v13 = vrot.slane %v311_v11, %v315_v10  ;;  %v320_v14 = vrot.slane %v311_v11, %v319_v12 }
  0x87   : > { %612 = vmatmul.mubr.msk.bf16.vlgmr.msra.gmra.mrb[0].mxu0 %vm343_vm0, %v306_v7 }
 0x15a   : > { %v381_v15 = vpop.f32.mrb[0].mxu0 }
 0x15b   : > { %v382_v17 = vadd.f32 %v381_v15, %v316_v13  ;;  %v383_v18 = vpop.f32.mrb[1].mxu0 }
 0x15c   : > { %v384_v19 = vadd.f32 %v383_v18, %v320_v14  ;;  %v385_v20 = vpop.f32.mrb[2].mxu0 }
 0x15d   : > { %v389_v21 = vmax.f32 %v388_v16, %v382_v17  ;;  %407 = vst [vmem:[%s1297_s15] sm:$0xff] %v382_v17  ;;  %v386_v22 = vpop.f32.mrb[3].mxu0 }
 0x15e   : > { %408 = vst [vmem:[%s1297_s15 + $0x8] sm:$0xff] %v384_v19 }
 0x15f   : > { %v390_v23 = vmax.f32 %v389_v21, %v384_v19 }
 0x161   : > { %v391_v24 = vsub.f32 %v382_v17, %v390_v23  ;;  %v395_v25 = vsub.f32 %v384_v19, %v390_v23  ;;  %v400_v26 = vsub.f32 %v388_v16, %v390_v23  ;;  %406 = vst [vmem:[#allocation2] sm:$0xff] %v390_v23 }
 0x163   : > { %v392_v27 = vmul.f32 1.442695, %v391_v24  ;;  %v396_v28 = vmul.f32 1.442695, %v395_v25  ;;  %v401_v29 = vmul.f32 1.442695, %v400_v26 }
 0x165   : > { %764 = vpow2.f32 %v392_v27 }
 0x166   : > { %766 = vpow2.f32 %v396_v28 }
 0x167   : > { %768 = vpow2.f32 %v401_v29 }
 0x168   : > { %v413_v37 = vld [vmem:[#allocation2] sm:$0xff] (!%p613_p8) }
 0x169   : > { %415 = vmax.xlane.f32.xlu0 (!%p613_p8), %v413_v37 }
 0x16f   : > { %v765_v30 = vpop.eup %764 }
 0x170   : > { %v767_v32 = vpop.eup %766  ;;  %412 = sbr.rel (%p613_p8) target bundleno = 678 (0x2a6), region = 48 }
 0x171   : > { %v769_v33 = vpop.eup %768  ;;  %v398_v34 = vadd.f32 %v767_v32, %v765_v30 }
 0x172   : > { %v403_v35 = vmul.f32 %v769_v33, %v399_v31 }
 0x174   : > { %v404_v36 = vadd.f32 %v403_v35, %v398_v34 }
 0x176   : > { %405 = vst [vmem:[#allocation3] sm:$0xff] %v404_v36 }
 0x17d   : > { %v414_v41 = vld [vmem:[#allocation3] sm:$0xff] }
 0x1f6   : > { %v416_v38 = vpop.xlane.xlu0 %415 }
 0x1f7   : > { %v417_v39 = vsub.f32 %v413_v37, %v416_v38 }
 0x1f9   : > { %v418_v40 = vmul.f32 1.442695, %v417_v39 }
 0x1fb   : > { %770 = vpow2.f32 %v418_v40 }
 0x205   : > { %v771_v42 = vpop.eup %770 }
 0x206   : > { %v420_v43 = vmul.f32 %v771_v42, %v414_v41 }
 0x208   : > { %421 = vadd.xlane.f32.xlu0 %v420_v43 }
 0x295   : > { %v422_v44 = vpop.xlane.xlu0 %421 }
 0x296   : > { %772 = vlog2.f32 %v422_v44 }
 0x2a0   : > { %v773_v45 = vpop.eup %772 }
 0x2a1   : > { %v424_v46 = vmul.f32 0.6931472, %v773_v45 }
 0x2a3   : > { %v425_v47 = vadd.f32 %v424_v46, %v416_v38 }
 0x2a5   : > { %427 = vst.msk [vmem:[%s1295_s18] sm:$0xff] %vm426_vm1, %v425_v47 }
 0x2a6 PF: > { %s616_s24 = sshll.u32 %s972_s25, 2  ;;  %s449_s6 = sshll.u32 %s1297_s15, 4  ;;  %s1309_s6 = int_to_ptr.vmem [resolvable:$true] %s449_s6 }
 0x2a7   : > { %s445_s9 = sadd.s32 %s616_s24, %s1278_s27  ;;  %s429_s29 = scalar_lea.sflag [#allocation6], %s279_s7 }
 0x2a8   : > { %s617_s13 = sshll.u32 %s445_s9, 7  ;;  %s834_s21 = scalar_lea.vmem %s1309_s6, 256 }
 0x2a9   : > { %s447_s26 = scalar_lea.hbm %s1387_s3, %s617_s13  ;;  %p835_p0 = scmp.ne.s32.totalorder %s1309_s6, %s834_s21 }
 0x2aa   : > { %p1424_p2 = scmp.ne.s32.totalorder %s1413_s11, 0  ;;  %s994_s25 = smov [#allocation9]  }
 0x2ab   : > { %s838_s27 = sshll.u32 %s994_s25, 4  ;;  %s839_s27 = int_to_ptr.vmem [resolvable:$false] %s838_s27 }
 0x2ac   : > { %p836_p9 = pnand %p835_p0, %p1424_p2  ;;  %s840_s5 = scalar_lea.vmem %s839_s27, 512 }
 0x2ad   : > { %p841_p10 = scmp.lt.s32.totalorder %s1309_s6, %s839_s27  ;;  %p842_p6 = scmp.lt.s32.totalorder %s840_s5, %s834_s21 }
 0x2ae   : > { %p837_p7 = pneg %p836_p9 }
 0x2af   : > { %p843_p4 = por %p842_p6, %p841_p10 }
 0x2b1   : > { %p844_p3 = pnand %p843_p4, %p837_p7 }
 0x2b3   : > { %847 = shalt.err (!%p844_p3)
}
 0x2b4   : > { %s848_s8 = scalar_lea.hbm %s447_s26, 256  ;;  %s852_s14 = scalar_lea.hbm %s1387_s3, 1024 }
 0x2b5   : > { %p849_p13 = scmp.ne.s32.totalorder %s447_s26, %s848_s8  ;;  %p853_p5 = scmp.lt.u32.totalorder %s447_s26, %s1387_s3 }
 0x2b6   : > { %p854_p12 = scmp.lt.u32.totalorder %s852_s14, %s848_s8  ;;  %p856_p0 = scmp.lt.u32.totalorder %s848_s8, %s447_s26 }
 0x2b7   : > { %p850_p11 = pnand %p849_p13, %p1424_p2 }
 0x2b8   : > { %p855_p8 = por %p854_p12, %p853_p5 }
 0x2b9   : > { %p851_p1 = pneg %p850_p11 }
 0x2ba   : > { %p857_p9 = por %p856_p0, %p855_p8 }
 0x2bc   : > { %p858_p7 = pnand %p857_p9, %p851_p1 }
 0x2be   : > { %861 = shalt.err (!%p858_p7)
}
 0x2bf   : > { %625 = dma.vmem_to_hbm [thread:$0]  (%p1424_p2), %s1309_s6, 256, %s447_s26, %s429_s29  }
 0x2c0 PF: > { %s1425_s24 = sld [smem:[#allocation13_spill]]  ;;  %p639_p10 = scmp.ge.s32.totalorder %s984_s28, 2 }
 0x2c1   : > { %p1426_p6 = scmp.ne.s32.totalorder %s1415_s10, 0 }
 0x2c3   : > { %p635_p4 = pnand %p639_p10, %p1426_p6 }
 0x2c6   : > { %s464_s9 = sand.u32 1, %s1425_s24  }
 0x2c7   : > { %s465_s13 = scalar_lea.sflag [#allocation6], %s464_s9 }
 0x2c8   : > { %927 = dma.done.wait (!%p635_p4), %s465_s13, 256  }
 0x2c9   : > { %929 = vsyncadd (!%p635_p4), %s465_s13, 4294967040  ;;  %s24_s28 = sadd.s32 1, %s984_s28   ;;  %s1428_s11 = sld [smem:[#allocation20_spill]] }
 0x2ca   : > { %p1337_p3 = scmp.ge.s32.totalorder %s24_s28, 6   ;;  %s1429_s6 = sld [smem:[#allocation18_spill]] }
 0x2cb   : > { %s1430_s0 = sld [smem:[#allocation19_spill]]  ;;  %s1431_s24 = sld [smem:[#allocation14_spill]] }
 0x2cc   : > { %s1432_s25 = sld [smem:[#allocation15_spill]]  ;;  %s1433_s26 = sld [smem:[#allocation16_spill]] }
 0x2cd   : > { %s1434_s27 = sld [smem:[#allocation17_spill]]  ;;  %s1435_s15 = smov %s936_s16 }
 0x2ce   : > { %s1436_s16 = smov %s940_s17  ;;  %s1438_s18 = smov %s948_s19 }
 0x2cf   : > { %s1437_s17 = smov %s1428_s11  ;;  %s1439_s19 = smov %s952_s20 }
 0x2d0   : > { %s1440_s20 = smov %s1429_s6  ;;  %s1441_s21 = smov %s960_s22 }
 0x2d1   : > { %s1442_s22 = smov %s964_s23  ;;  %s1443_s23 = smov %s1430_s0 }
 0x2d2   :  { %23 = sbr.rel (!%p1337_p3) target bundleno = 14 (0xe), region = 113 }
 0x2d9   :  { %477 = vsyncpa [#allocation5], 1 }
 0x2da   :  { %479 = vsyncpa [#allocation5 + $0x1], 1 }
 0x2db   :  { %480 = vsyncpa [#allocation8], 1 }
 0x2dc   :  { %482 = vsyncpa [#allocation8 + $0x1], 1 }
 0x2dd   :  { %483 = vsyncpa [#allocation6], 1 }
 0x2de   :  { %485 = vsyncpa [#allocation6 + $0x1], 1 }

</bundles_post_ra>
